<compile_context>
chip_gen: v6e
topology: v6e:2x2x1
jax: 0.10.0
libtpu: 0.0.40
codegen_flags: <defaults>
</compile_context>

<pallas_src>
import jax
import jax.numpy as jnp
from jax.experimental import pallas as pl
from jax.experimental.pallas import tpu as pltpu

CLASS_NUM = 8          # Config.class_num (includes background class 0)
VARIANCES = (0.1, 0.2)
_MAX_TILE = 32768      # boxes per grid step (~5 MB resident incl. double buffer)


def _round_up(x, m):
    return (x + m - 1) // m * m


# ----------------------------- Pallas kernel ------------------------------

def _per_box_kernel(conf_ref, tconf_ref, loc_ref, tloc_ref, ce_ref, sl1_ref):
    """Per-box CE (mining + final conf loss) and per-box masked smooth-L1."""
    conf = conf_ref[...]                                   # (C, T) f32
    t = tconf_ref[...]                                     # (1, T) i32

    # utils.log_sum_exp over the class (sublane) axis, numerically stable.
    m = jnp.max(conf, axis=0, keepdims=True)               # (1, T)
    lse = jnp.log(jnp.sum(jnp.exp(conf - m), axis=0, keepdims=True)) + m

    # conf.gather(1, target_conf) via one-hot over the class axis
    # (no dynamic per-lane gather on TPU; 8 compare/selects on the VPU).
    cls = jax.lax.broadcasted_iota(jnp.int32, conf.shape, 0)
    conf_gt = jnp.sum(jnp.where(cls == t, conf, 0.0), axis=0, keepdims=True)

    # Per-box cross-entropy term, lane-dense output row.
    ce_ref[...] = lse - conf_gt                            # (1, T)

    # smooth_l1_loss(pre_loc[pos], tar_loc[pos], size_average=False):
    # per-box sum over the 4 coords, zeroed for non-positive boxes.
    # The final scalar sum happens in the wrapper.
    posf = (t > 0).astype(jnp.float32)                     # (1, T)
    diff = loc_ref[...] - tloc_ref[...]                    # (4, T)
    ad = jnp.abs(diff)
    sl1 = jnp.where(ad < 1.0, 0.5 * diff * diff, ad - 0.5)
    sl1_ref[...] = jnp.sum(sl1, axis=0, keepdims=True) * posf


def _per_box_losses(conf_t, tconf, loc_t, tloc_t, tile):
    c, n_pad = conf_t.shape
    num_tiles = n_pad // tile
    # Advisory estimate: HBM / VPU bound, no matmul flops.
    bytes_accessed = 4 * n_pad * (c + 1 + 4 + 4 + 1 + 1)
    cost = pl.CostEstimate(flops=int(n_pad * (6 * c + 30)),
                           transcendentals=int(n_pad * (c + 1)),
                           bytes_accessed=int(bytes_accessed))
    return pl.pallas_call(
        _per_box_kernel,
        out_shape=(
            jax.ShapeDtypeStruct((1, n_pad), jnp.float32),   # per-box CE
            jax.ShapeDtypeStruct((1, n_pad), jnp.float32),   # masked smooth-L1
        ),
        grid_spec=pltpu.PrefetchScalarGridSpec(
            num_scalar_prefetch=0,
            grid=(num_tiles,),
            in_specs=[
                pl.BlockSpec((c, tile), lambda i: (0, i)),   # conf   (classes x boxes)
                pl.BlockSpec((1, tile), lambda i: (0, i)),   # target class
                pl.BlockSpec((4, tile), lambda i: (0, i)),   # pred loc (coords x boxes)
                pl.BlockSpec((4, tile), lambda i: (0, i)),   # target loc
            ],
            out_specs=(
                pl.BlockSpec((1, tile), lambda i: (0, i)),
                pl.BlockSpec((1, tile), lambda i: (0, i)),
            ),
        ),
        compiler_params=pltpu.CompilerParams(
            dimension_semantics=("parallel",)),
        cost_estimate=cost,
    )(conf_t, tconf, loc_t, tloc_t)


# --------------------------- plain-JAX glue (match) ------------------------

def _point_form(boxes):                       # (cx,cy,w,h) -> (x1,y1,x2,y2)
    return jnp.concatenate([boxes[:, :2] - boxes[:, 2:] / 2,
                            boxes[:, :2] + boxes[:, 2:] / 2], axis=1)


def _jaccard(a, b):                           # a:[T,4] b:[P,4] corner form
    max_xy = jnp.minimum(a[:, None, 2:], b[None, :, 2:])
    min_xy = jnp.maximum(a[:, None, :2], b[None, :, :2])
    wh = jnp.clip(max_xy - min_xy, 0.0)
    inter = wh[..., 0] * wh[..., 1]
    area_a = ((a[:, 2] - a[:, 0]) * (a[:, 3] - a[:, 1]))[:, None]
    area_b = ((b[:, 2] - b[:, 0]) * (b[:, 3] - b[:, 1]))[None, :]
    return inter / (area_a + area_b - inter)


def _encode(matched, priors):
    g_cxcy = (matched[:, :2] + matched[:, 2:]) / 2 - priors[:, :2]
    g_cxcy = g_cxcy / (VARIANCES[0] * priors[:, 2:])
    g_wh = (matched[:, 2:] - matched[:, :2]) / priors[:, 2:]
    g_wh = jnp.log(g_wh) / VARIANCES[1]
    return jnp.concatenate([g_cxcy, g_wh], axis=1)


def _match(threshold, truths, priors, labels, valid):
    """utils.match with a validity mask so the batch can be vmapped."""
    t = truths.shape[0]
    p = priors.shape[0]
    overlaps = _jaccard(truths, _point_form(priors))            # [T, P]
    overlaps = jnp.where(valid[:, None], overlaps, -1.0)        # mask pad GT
    best_prior_idx = jnp.argmax(overlaps, axis=1)               # [T]
    best_truth_overlap = jnp.max(overlaps, axis=0)              # [P]
    best_truth_idx = jnp.argmax(overlaps, axis=0)               # [P]
    # Force each valid GT's best prior to be positive; padded rows scatter
    # out-of-bounds, which JAX drops.
    scatter_idx = jnp.where(valid, best_prior_idx, p)
    best_truth_overlap = best_truth_overlap.at[scatter_idx].set(2.0)
    best_truth_idx = best_truth_idx.at[scatter_idx].set(jnp.arange(t))
    matches = truths[best_truth_idx]                            # [P, 4]
    conf = labels[best_truth_idx].astype(jnp.int32) + 1
    conf = jnp.where(best_truth_overlap < threshold, 0, conf)
    loc = _encode(matches, priors)
    return loc, conf


# ------------------------------ LossFun.forward ----------------------------

def loss_fun(loc_heads, conf_heads, targets, priors_list):
    batch_num = loc_heads[0].shape[0]
    # torch.cat([o.view(B, -1, k) for o in ...], 1)  (row-major view == reshape)
    loc_data = jnp.concatenate([o.reshape(o.shape[0], -1, 4)
                                for o in loc_heads], axis=1)
    conf_data = jnp.concatenate([o.reshape(o.shape[0], -1, CLASS_NUM)
                                 for o in conf_heads], axis=1)
    priors = jnp.concatenate([o.reshape(-1, 4) for o in priors_list], axis=0)
    box_num = loc_data.shape[1]

    # --- vectorized (vmapped) ground-truth matching over the batch ---
    t_max = max(int(t.shape[0]) for t in targets)
    pad_box = jnp.array([0.0, 0.0, 1.0, 1.0], jnp.float32)   # finite encode
    truths_b, labels_b, valid_b = [], [], []
    for t in targets:
        n = int(t.shape[0])
        pad = t_max - n
        tr = t[:, :-1].astype(jnp.float32)
        lb = t[:, -1].astype(jnp.float32)
        if pad:
            tr = jnp.concatenate([tr, jnp.tile(pad_box[None], (pad, 1))], 0)
            lb = jnp.concatenate([lb, jnp.zeros((pad,), jnp.float32)], 0)
        truths_b.append(tr)
        labels_b.append(lb)
        valid_b.append(jnp.arange(t_max) < n)
    truths_b = jnp.stack(truths_b)                       # [B, Tmax, 4]
    labels_b = jnp.stack(labels_b)                       # [B, Tmax]
    valid_b = jnp.stack(valid_b)                         # [B, Tmax] bool

    target_loc, target_conf = jax.vmap(
        lambda tr, lb, vd: _match(0.5, tr, priors, lb, vd))(
            truths_b, labels_b, valid_b)                 # [B,P,4], [B,P] i32

    # --- lane-dense, padded, transposed layouts for the Pallas kernel ---
    n_rows = batch_num * box_num
    tile = min(_MAX_TILE, _round_up(n_rows, 128))
    n_pad = _round_up(n_rows, tile)
    pad = n_pad - n_rows

    conf_t = conf_data.reshape(n_rows, CLASS_NUM).astype(jnp.float32).T  # (C, N)
    loc_t = loc_data.reshape(n_rows, 4).astype(jnp.float32).T            # (4, N)
    tloc_t = target_loc.reshape(n_rows, 4).astype(jnp.float32).T         # (4, N)
    tconf = target_conf.reshape(1, n_rows).astype(jnp.int32)             # (1, N)
    if pad:
        conf_t = jnp.pad(conf_t, ((0, 0), (0, pad)))
        loc_t = jnp.pad(loc_t, ((0, 0), (0, pad)))
        tloc_t = jnp.pad(tloc_t, ((0, 0), (0, pad)))
        tconf = jnp.pad(tconf, ((0, 0), (0, pad)))       # pad boxes: class 0

    ce_row, sl1_row = _per_box_losses(conf_t, tconf, loc_t, tloc_t, tile)

    # Padded boxes contribute 0 to sl1 (posf == 0); whole-array sum is exact.
    loss_l = jnp.sum(sl1_row)
    pos = target_conf > 0                                # [B, P]
    # NOTE: matches torch behaviour (NaN if the whole batch has 0 positives).
    n_total = jnp.sum(pos).astype(jnp.float32)           # num_pos.sum()

    ce = ce_row[0, :n_rows].reshape(batch_num, box_num)  # per-box CE

    # --- hard negative mining: one argsort + inverse-permutation scatter ---
    loss_c_rank = jnp.where(pos, 0.0, ce)
    order = jnp.argsort(-loss_c_rank, axis=1)            # descending
    ranks = jnp.zeros((batch_num, box_num), jnp.int32)
    ranks = ranks.at[jnp.arange(batch_num)[:, None], order].set(
        jnp.broadcast_to(jnp.arange(box_num, dtype=jnp.int32)[None, :],
                         (batch_num, box_num)))
    num_pos = jnp.sum(pos.astype(jnp.int32), axis=1, keepdims=True)
    num_neg = jnp.minimum(3 * num_pos, box_num - 1)
    neg = ranks < num_neg

    # F.cross_entropy(conf_p, targets_weighted, size_average=False)
    sel = (pos | neg).astype(jnp.float32)
    loss_c = jnp.sum(ce * sel)

    # TODO(synk): torch casts the final losses to float64 (.double()); kept
    # float32 here since TPU kernels/outputs are f32.
    return loss_l / n_total, loss_c / n_total


# --------------------------------- example ---------------------------------

def _build_priors(fmap_sizes, scales):
    priors = []
    for fh, fw in fmap_sizes:
        ys = (jnp.arange(fh, dtype=jnp.float32) + 0.5) / fh
        xs = (jnp.arange(fw, dtype=jnp.float32) + 0.5) / fw
        cy, cx = jnp.meshgrid(ys, xs, indexing="ij")
        cells = jnp.stack([cx.ravel(), cy.ravel()], axis=-1)      # [HW, 2]
        per_cell = [jnp.concatenate(
            [cells, jnp.full((cells.shape[0], 2), s, jnp.float32)], axis=-1)
            for s in scales]
        priors.append(jnp.stack(per_cell, axis=1).reshape(-1, 4))  # [HW*A, 4]
    return priors


def _make_targets(key, n):
    kc, ks, kl = jax.random.split(key, 3)
    centers = jax.random.uniform(kc, (n, 2), minval=0.25, maxval=0.75)
    sizes = jax.random.uniform(ks, (n, 2), minval=0.10, maxval=0.30)
    x1y1 = centers - sizes / 2
    x2y2 = centers + sizes / 2
    labels = jax.random.randint(kl, (n, 1), 0, CLASS_NUM - 1).astype(jnp.float32)
    return jnp.concatenate([x1y1, x2y2, labels], axis=1)           # [n, 5]


if __name__ == "__main__":
    key = jax.random.PRNGKey(0)
    k1, k2, k3, k4, k5, k6 = jax.random.split(key, 6)

    B, A = 2, 4
    fmaps = [(4, 4), (2, 2)]
    scales = [0.1, 0.2, 0.3, 0.4]

    # NCHW multibox head outputs (synthetic)
    loc_heads = [0.1 * jax.random.normal(k1, (B, A * 4, 4, 4), jnp.float32),
                 0.1 * jax.random.normal(k2, (B, A * 4, 2, 2), jnp.float32)]
    conf_heads = [jax.random.normal(k3, (B, A * CLASS_NUM, 4, 4), jnp.float32),
                  jax.random.normal(k4, (B, A * CLASS_NUM, 2, 2), jnp.float32)]
    priors_list = _build_priors(fmaps, scales)                    # 64 + 16 = 80 priors
    targets = [_make_targets(k5, 2), _make_targets(k6, 3)]        # per-image GT

    loss_l, loss_c = loss_fun(loc_heads, conf_heads, targets, priors_list)
    jax.block_until_ready((loss_l, loss_c))
    print("KERNEL_OK")
</pallas_src>

<mosaic_0001>
module attributes {stable_mosaic.version = 11 : i64} {
  func.func @_per_box_kernel(%arg0: i32, %arg1: memref<8x256xf32, #tpu.memory_space<vmem>>, %arg2: memref<1x256xi32, #tpu.memory_space<vmem>>, %arg3: memref<4x256xf32, #tpu.memory_space<vmem>>, %arg4: memref<4x256xf32, #tpu.memory_space<vmem>>, %arg5: memref<1x256xf32, #tpu.memory_space<vmem>>, %arg6: memref<1x256xf32, #tpu.memory_space<vmem>>) attributes {dimension_semantics = [#tpu.dimension_semantics<parallel>], iteration_bounds = array<i64: 1>, scalar_prefetch = 0 : i64, scratch_operands = 0 : i64, tpu.core_type = #tpu.core_type<tc>, window_params = [{transform_indices = @transform_0, window_bounds = array<i64: 8, 256>}, {transform_indices = @transform_1, window_bounds = array<i64: 1, 256>}, {transform_indices = @transform_2, window_bounds = array<i64: 4, 256>}, {transform_indices = @transform_3, window_bounds = array<i64: 4, 256>}, {transform_indices = @transform_4, window_bounds = array<i64: 1, 256>}, {transform_indices = @transform_5, window_bounds = array<i64: 1, 256>}]} {
    %c0 = arith.constant 0 : index
    %c0_0 = arith.constant 0 : index
    %0 = vector.load %arg1[%c0, %c0_0] : memref<8x256xf32, #tpu.memory_space<vmem>>, vector<8x256xf32>
    %c0_1 = arith.constant 0 : index
    %c0_2 = arith.constant 0 : index
    %1 = vector.load %arg2[%c0_1, %c0_2] : memref<1x256xi32, #tpu.memory_space<vmem>>, vector<1x256xi32>
    %cst = arith.constant dense<0xFF800000> : vector<256xf32>
    %2 = vector.multi_reduction <maximumf>, %0, %cst [0] : vector<8x256xf32> to vector<256xf32>
    %3 = vector.shape_cast %2 : vector<256xf32> to vector<1x256xf32>
    %4 = vector.broadcast %3 : vector<1x256xf32> to vector<8x256xf32>
    %5 = arith.subf %0, %4 : vector<8x256xf32>
    %6 = math.exp %5 : vector<8x256xf32>
    %cst_3 = arith.constant dense<0.000000e+00> : vector<256xf32>
    %7 = vector.multi_reduction <add>, %6, %cst_3 [0] : vector<8x256xf32> to vector<256xf32>
    %8 = vector.shape_cast %7 : vector<256xf32> to vector<1x256xf32>
    %9 = math.log %8 : vector<1x256xf32>
    %10 = arith.addf %9, %3 : vector<1x256xf32>
    %11 = tpu.iota {dimensions = array<i32: 0>} : vector<8x256xi32>
    %12 = vector.broadcast %1 : vector<1x256xi32> to vector<8x256xi32>
    %13 = arith.cmpi eq, %11, %12 : vector<8x256xi32>
    %cst_4 = arith.constant 0.000000e+00 : f32
    %14 = vector.broadcast %cst_4 : f32 to vector<8x256xf32>
    %15 = arith.select %13, %0, %14 : vector<8x256xi1>, vector<8x256xf32>
    %cst_5 = arith.constant dense<0.000000e+00> : vector<256xf32>
    %16 = vector.multi_reduction <add>, %15, %cst_5 [0] : vector<8x256xf32> to vector<256xf32>
    %17 = vector.shape_cast %16 : vector<256xf32> to vector<1x256xf32>
    %18 = arith.subf %10, %17 : vector<1x256xf32>
    %c0_6 = arith.constant 0 : index
    %c0_7 = arith.constant 0 : index
    %19 = vector.load %arg5[%c0_6, %c0_7] : memref<1x256xf32, #tpu.memory_space<vmem>>, vector<1x256xf32>
    tpu.vector_store %arg5[%c0_6, %c0_7], %18 {strides = array<i32>} : memref<1x256xf32, #tpu.memory_space<vmem>>, vector<1x256xf32>,
    %c0_i32 = arith.constant 0 : i32
    %20 = vector.broadcast %c0_i32 : i32 to vector<1x256xi32>
    %21 = arith.cmpi sgt, %1, %20 : vector<1x256xi32>
    %22 = arith.extui %21 : vector<1x256xi1> to vector<1x256xi32>
    %23 = arith.sitofp %22 : vector<1x256xi32> to vector<1x256xf32>
    %c0_8 = arith.constant 0 : index
    %c0_9 = arith.constant 0 : index
    %24 = vector.load %arg3[%c0_8, %c0_9] : memref<4x256xf32, #tpu.memory_space<vmem>>, vector<4x256xf32>
    %c0_10 = arith.constant 0 : index
    %c0_11 = arith.constant 0 : index
    %25 = vector.load %arg4[%c0_10, %c0_11] : memref<4x256xf32, #tpu.memory_space<vmem>>, vector<4x256xf32>
    %26 = arith.subf %24, %25 : vector<4x256xf32>
    %27 = math.absf %26 : vector<4x256xf32>
    %cst_12 = arith.constant 1.000000e+00 : f32
    %28 = vector.broadcast %cst_12 : f32 to vector<4x256xf32>
    %29 = arith.cmpf olt, %27, %28 : vector<4x256xf32>
    %cst_13 = arith.constant 5.000000e-01 : f32
    %30 = vector.broadcast %cst_13 : f32 to vector<4x256xf32>
    %31 = arith.mulf %30, %26 : vector<4x256xf32>
    %32 = arith.mulf %31, %26 : vector<4x256xf32>
    %cst_14 = arith.constant 5.000000e-01 : f32
    %33 = vector.broadcast %cst_14 : f32 to vector<4x256xf32>
    %34 = arith.subf %27, %33 : vector<4x256xf32>
    %35 = arith.select %29, %32, %34 : vector<4x256xi1>, vector<4x256xf32>
    %cst_15 = arith.constant dense<0.000000e+00> : vector<256xf32>
    %36 = vector.multi_reduction <add>, %35, %cst_15 [0] : vector<4x256xf32> to vector<256xf32>
    %37 = vector.shape_cast %36 : vector<256xf32> to vector<1x256xf32>
    %38 = arith.mulf %37, %23 : vector<1x256xf32>
    %c0_16 = arith.constant 0 : index
    %c0_17 = arith.constant 0 : index
    %39 = vector.load %arg6[%c0_16, %c0_17] : memref<1x256xf32, #tpu.memory_space<vmem>>, vector<1x256xf32>
    tpu.vector_store %arg6[%c0_16, %c0_17], %38 {strides = array<i32>} : memref<1x256xf32, #tpu.memory_space<vmem>>, vector<1x256xf32>,
    return
  }
  func.func @transform_0(%arg0: i32) -> (i32, i32) {
    %c0_i32 = arith.constant 0 : i32
    %c0_i32_0 = arith.constant 0 : i32
    return %c0_i32, %arg0 : i32, i32
  }
  func.func @transform_1(%arg0: i32) -> (i32, i32) {
    %c0_i32 = arith.constant 0 : i32
    %c0_i32_0 = arith.constant 0 : i32
    return %c0_i32, %arg0 : i32, i32
  }
  func.func @transform_2(%arg0: i32) -> (i32, i32) {
    %c0_i32 = arith.constant 0 : i32
    %c0_i32_0 = arith.constant 0 : i32
    return %c0_i32, %arg0 : i32, i32
  }
  func.func @transform_3(%arg0: i32) -> (i32, i32) {
    %c0_i32 = arith.constant 0 : i32
    %c0_i32_0 = arith.constant 0 : i32
    return %c0_i32, %arg0 : i32, i32
  }
  func.func @transform_4(%arg0: i32) -> (i32, i32) {
    %c0_i32 = arith.constant 0 : i32
    %c0_i32_0 = arith.constant 0 : i32
    return %c0_i32, %arg0 : i32, i32
  }
  func.func @transform_5(%arg0: i32) -> (i32, i32) {
    %c0_i32 = arith.constant 0 : i32
    %c0_i32_0 = arith.constant 0 : i32
    return %c0_i32, %arg0 : i32, i32
  }
}

</mosaic_0001>

<bundles_post_ra>
// kernel: tpu_custom_call.1
= control target key start
LH: loop header
LB: loop body
LE: loop exit
PB: predicated region body
PF: predicated region fallthrough
CT: control target
= control target key end

     0   :  { %11 = vsyncpa [#allocation3], 0  ;;  %s483_s0 = inlined_call_operand.hbm [shape: f32[8,256], index: 0, kind: input, shape index: {}]   ;;  %s484_s1 = inlined_call_operand.hbm [shape: s32[1,256], index: 1, kind: input, shape index: {}]   ;;  %s485_s2 = inlined_call_operand.hbm [shape: f32[4,256], index: 2, kind: input, shape index: {}]   ;;  %s486_s3 = inlined_call_operand.hbm [shape: f32[4,256], index: 3, kind: input, shape index: {}]   ;;  %s487_s4 = inlined_call_operand.hbm [shape: f32[1,256], index: 4, kind: output, shape index: {0}]   ;;  %s488_s5 = inlined_call_operand.hbm [shape: f32[1,256], index: 5, kind: output, shape index: {1}]  }
   0x1   :  { %12 = vsyncpa [#allocation6], 0 }
   0x2   :  { %13 = vsyncpa [#allocation9], 0 }
   0x3   :  { %14 = vsyncpa [#allocation4], 0 }
   0x4   :  { %15 = vsyncpa [#allocation12], 0  ;;  %s399_s18 = smov [#allocation5]   ;;  %s400_s20 = smov [#allocation2]  }
   0x5   :  { %s32_s19 = sshll.u32 %s399_s18, 4  ;;  %s22_s21 = sshll.u32 %s400_s20, 4  ;;  %s33_s19 = int_to_ptr.vmem [resolvable:$true] %s32_s19  ;;  %s23_s21 = int_to_ptr.vmem [resolvable:$true] %s22_s21 }
   0x6   :  { %s277_s22 = scalar_lea.vmem %s33_s19, 32  ;;  %p282_p1 = scmp.lt.s32.totalorder %s33_s19, %s33_s19 }
   0x7   :  { %p278_p0 = scmp.ne.s32.totalorder %s33_s19, %s277_s22  ;;  %p283_p2 = scmp.lt.s32.totalorder %s277_s22, %s277_s22 }
   0x9   :  { %p284_p3 = por %p283_p2, %p282_p1 }
   0xb   :  { %p285_p4 = pnand %p284_p3, %p278_p0 }
   0xd   :  { %288 = shalt.err (!%p285_p4)
}
   0xe   :  { %35 = dma.hbm_to_vmem [thread:$0]  %s484_s1, 32, %s33_s19, [#allocation6]  }
   0xf   :  { %s297_s25 = scalar_lea.vmem %s23_s21, 256  ;;  %p302_p6 = scmp.lt.s32.totalorder %s23_s21, %s23_s21 }
  0x10   :  { %p298_p5 = scmp.ne.s32.totalorder %s23_s21, %s297_s25  ;;  %p303_p7 = scmp.lt.s32.totalorder %s297_s25, %s297_s25 }
  0x12   :  { %p304_p8 = por %p303_p7, %p302_p6 }
  0x14   :  { %p305_p9 = pnand %p304_p8, %p298_p5 }
  0x16   :  { %308 = shalt.err (!%p305_p9)
}
  0x17   :  { %25 = dma.hbm_to_vmem [thread:$0]  %s483_s0, 256, %s23_s21, [#allocation3]  }
  0x18   :  { %s401_s28 = smov [#allocation7]   ;;  %s402_s30 = smov [#allocation8]  }
  0x19   :  { %s42_s29 = sshll.u32 %s401_s28, 4  ;;  %s52_s6 = sshll.u32 %s402_s30, 4  ;;  %s43_s29 = int_to_ptr.vmem [resolvable:$true] %s42_s29  ;;  %s53_s6 = int_to_ptr.vmem [resolvable:$true] %s52_s6 }
  0x1a   :  { %s317_s7 = scalar_lea.vmem %s43_s29, 128  ;;  %p322_p11 = scmp.lt.s32.totalorder %s43_s29, %s43_s29 }
  0x1b   :  { %p318_p10 = scmp.ne.s32.totalorder %s43_s29, %s317_s7  ;;  %p323_p12 = scmp.lt.s32.totalorder %s317_s7, %s317_s7 }
  0x1d   :  { %p324_p13 = por %p323_p12, %p322_p11 }
  0x1f   :  { %p325_p0 = pnand %p324_p13, %p318_p10 }
  0x21   :  { %328 = shalt.err (!%p325_p0)
}
  0x22   :  { %45 = dma.hbm_to_vmem [thread:$0]  %s485_s2, 128, %s43_s29, [#allocation6]  }
  0x23   :  { %s337_s9 = scalar_lea.vmem %s53_s6, 128  ;;  %p342_p2 = scmp.lt.s32.totalorder %s53_s6, %s53_s6 }
  0x24   :  { %p338_p1 = scmp.ne.s32.totalorder %s53_s6, %s337_s9  ;;  %p343_p3 = scmp.lt.s32.totalorder %s337_s9, %s337_s9 }
  0x26   :  { %p344_p4 = por %p343_p3, %p342_p2 }
  0x28   :  { %p345_p5 = pnand %p344_p4, %p338_p1 }
  0x2a   :  { %348 = shalt.err (!%p345_p5)
}
  0x2b   :  { %55 = dma.hbm_to_vmem [thread:$0]  %s486_s3, 128, %s53_s6, [#allocation9]  }
  0x2c   :  { %389 = dma.done.wait [#allocation3], 256  }
  0x2d   :  { %390 = vsyncadd [#allocation3], 4294967040 }
  0x2e   :  { %391 = dma.done.wait [#allocation6], 160  }
  0x2f   :  { %392 = vsyncadd [#allocation6], 4294967136 }
  0x30   :  { %393 = dma.done.wait [#allocation9], 128  }
  0x31   :  { %394 = vsyncadd [#allocation9], 4294967168  ;;  %v449_v0 = vld [vmem:[#allocation2] sm:$0xff]  ;;  %v451_v1 = vld [vmem:[#allocation2 + $0x8] sm:$0xff]  ;;  %vm173_vm1 = vcmask 1043456   ;;  %v107_v22 = vlaneseq  ;;  %v403_v37 = vmov 0.0  }
  0x32   :  { %v71_v2 = vrot.slane %v449_v0, 4  ;;  %v77_v3 = vrot.slane %v451_v1, 4  ;;  %v161_v4 = vld [vmem:[#allocation7] sm:$0xff]  ;;  %v162_v5 = vld [vmem:[#allocation8] sm:$0xff]  ;;  %v70_v29 = vld [vmem:[#allocation5] sm:$0x3] }
  0x33   :  { %v163_v6 = vsub.f32 %v161_v4, %v162_v5  ;;  %v108_v32 = vshrl.u32 %v107_v22, 7  ;;  %vm158_vm2 = vcmp.gt.s32.totalorder %v70_v29, 0  ;;  %v404_v40 = vmov 1966171168   ;;  %s405_s2 = smov [#allocation11]  }
  0x34   :  { %v72_v7 = vmax.f32 %v449_v0, %v71_v2  ;;  %v78_v8 = vmax.f32 %v451_v1, %v77_v3  ;;  %v251_v38 = vsel %vm158_vm2, 1.0, %v403_v37  ;;  %v139_v41 = vunpack.c.l.s4 %v404_v40  ;;  %s236_s3 = sshll.u32 %s405_s2, 4  ;;  %s237_s3 = int_to_ptr.vmem [resolvable:$true] %s236_s3 }
  0x35   :  { %v164_v9 = vand.u32 2147483647, %v163_v6  ;;  %v166_v12 = vmul.f32 0.5, %v163_v6  ;;  %v111_v39 = vsub.s32 0, %v108_v32  ;;  %v115_v44 = vsub.s32 1, %v108_v32  ;;  %s349_s11 = scalar_lea.vmem %s237_s3, 32  ;;  %p354_p7 = scmp.lt.s32.totalorder %s237_s3, %s237_s3 }
  0x36   :  { %v73_v10 = vrot.slane %v72_v7, 2  ;;  %v79_v11 = vrot.slane %v78_v8, 2  ;;  %v140_v48 = vunpack.c.0.s8 %v139_v41  ;;  %vm465_vm5 = vcmp.lt.s32.totalorder %v107_v22, 256  ;;  %p350_p6 = scmp.ne.s32.totalorder %s237_s3, %s349_s11  ;;  %p355_p8 = scmp.lt.s32.totalorder %s349_s11, %s349_s11 }
  0x37   :  { %v252_v13 = vadd.f32 -0.5, %v164_v9  ;;  %vm165_vm0 = vcmp.lt.f32.partialorder %v164_v9, 1.0  ;;  %v167_v16 = vmul.f32 %v166_v12, %v163_v6  ;;  %v192_v47 = vrot.slane %v251_v38, %v111_v39 }
  0x38   :  { %v74_v14 = vmax.f32 %v72_v7, %v73_v10  ;;  %v80_v15 = vmax.f32 %v78_v8, %v79_v11  ;;  %v196_v51 = vrot.slane %v251_v38, %v115_v44  ;;  %v112_v54 = vrot.slane %v70_v29, %v111_v39  ;;  %p356_p9 = por %p355_p8, %p354_p7 }
  0x39   :  { %v169_v19 = vsel %vm165_vm0, %v167_v16, %v252_v13  ;;  %v116_v55 = vrot.slane %v70_v29, %v115_v44  ;;  %v143_v56 = vsub.s32 %v140_v48, %v108_v32 }
  0x3a   :  { %v75_v17 = vrot.slane %v74_v14, 1  ;;  %v81_v18 = vrot.slane %v80_v15, 1  ;;  %v171_v23 = vcombine.high %v169_v19, %v169_v19  ;;  %v174_v24 = vsel %vm173_vm1, %v169_v19, 0.0  ;;  %p357_p10 = pnand %p356_p9, %p350_p6 }
  0x3b   :  { %v175_v27 = vrot.slane %v174_v24, 4  ;;  %vm117_vm3 = vcmp.eq.s32.totalorder %v108_v32, %v112_v54  ;;  %vm118_vm4 = vcmp.eq.s32.totalorder %v108_v32, %v116_v55 }
  0x3c   :  { %v457_v20 = vmax.f32 %v74_v14, %v75_v17  ;;  %v459_v21 = vmax.f32 %v80_v15, %v81_v18  ;;  %v181_v28 = vsel %vm173_vm1, %v171_v23, 0.0  ;;  %v119_v5 = vsel %vm117_vm3, %v449_v0, 0.0 }
  0x3d   :  { %v176_v33 = vadd.f32 %v175_v27, %v174_v24  ;;  %v182_v34 = vrot.slane %v181_v28, 4  ;;  %v120_v8 = vsel %vm118_vm4, %v451_v1, 0.0  ;;  %v121_v11 = vrot.slane %v119_v5, 4 }
  0x3e   :  { %v83_v25 = vsub.f32 %v449_v0, %v457_v20  ;;  %v84_v26 = vsub.f32 %v451_v1, %v459_v21 }
  0x3f   :  { %v177_v35 = vrot.slane %v176_v33, 2  ;;  %v183_v36 = vadd.f32 %v182_v34, %v181_v28 }
  0x40   :  { %v85_v30 = vmul.f32 1.442695, %v83_v25  ;;  %v87_v31 = vmul.f32 1.442695, %v84_v26 }
  0x41   :  { %v178_v42 = vadd.f32 %v177_v35, %v176_v33  ;;  %v184_v43 = vrot.slane %v183_v36, 2 }
  0x42   :  { %261 = vpow2.f32 %v85_v30 }
  0x43   :  { %263 = vpow2.f32 %v87_v31  ;;  %v179_v45 = vrot.slane %v178_v42, 1  ;;  %v185_v46 = vadd.f32 %v184_v43, %v183_v36 }
  0x45   :  { %v180_v49 = vadd.f32 %v179_v45, %v178_v42  ;;  %v186_v50 = vrot.slane %v185_v46, 1 }
  0x47   :  { %v187_v52 = vadd.f32 %v186_v50, %v185_v46  ;;  %v199_v53 = vmul.f32 %v192_v47, %v180_v49 }
  0x49   :  { %v200_v57 = vmul.f32 %v196_v51, %v187_v52 }
  0x4b   :  { %v203_v59 = vcombine.low %v199_v53, %v200_v57 }
  0x4d   :  { %v210_v63 = vrot.slane %v203_v59, %v143_v56 }
  0x4f   :  { %v262_v58 = vpop.eup %261  ;;  %v217_v6 = vrot.slane %v210_v63, %v143_v56 }
  0x50   :  { %v264_v60 = vpop.eup %263  ;;  %v89_v61 = vrot.slane %v262_v58, 4 }
  0x51   :  { %v95_v62 = vrot.slane %v264_v60, 4  ;;  %219 = vst.msk [vmem:[#allocation11] sm:$0x3] %vm465_vm5, %v217_v6 }
  0x52   :  { %v90_v2 = vadd.f32 %v262_v58, %v89_v61 }
  0x53   :  { %v96_v4 = vadd.f32 %v264_v60, %v95_v62 }
  0x54   :  { %v91_v7 = vrot.slane %v90_v2, 2 }
  0x55   :  { %v97_v9 = vrot.slane %v96_v4, 2 }
  0x56   :  { %v92_v10 = vadd.f32 %v91_v7, %v90_v2 }
  0x57   :  { %360 = shalt.err (!%p357_p10)
}
  0x58   :  { %239 = dma.vmem_to_hbm [thread:$0]  %s237_s3, 32, %s488_s5, [#allocation12]   ;;  %v98_v0 = vadd.f32 %v97_v9, %v96_v4  ;;  %v127_v12 = vrot.slane %v120_v8, 4  ;;  %v93_v1 = vrot.slane %v92_v10, 1  ;;  %v122_v15 = vadd.f32 %v121_v11, %v119_v5 }
  0x59   :  { %s406_s5 = smov [#allocation10]  }
  0x5a   :  { %v99_v13 = vrot.slane %v98_v0, 1  ;;  %v94_v14 = vadd.f32 %v93_v1, %v92_v10  ;;  %v128_v17 = vadd.f32 %v127_v12, %v120_v8  ;;  %v123_v18 = vrot.slane %v122_v15, 2  ;;  %s226_s14 = sshll.u32 %s406_s5, 4  ;;  %s227_s14 = int_to_ptr.vmem [resolvable:$true] %s226_s14 }
  0x5b   :  { %s369_s15 = scalar_lea.vmem %s227_s14, 32  ;;  %p374_p12 = scmp.lt.s32.totalorder %s227_s14, %s227_s14 }
  0x5c   :  { %v100_v16 = vadd.f32 %v99_v13, %v98_v0  ;;  %265 = vlog2.f32 %v94_v14  ;;  %v129_v19 = vrot.slane %v128_v17, 2  ;;  %v124_v22 = vadd.f32 %v123_v18, %v122_v15  ;;  %p370_p11 = scmp.ne.s32.totalorder %s227_s14, %s369_s15  ;;  %p375_p13 = scmp.lt.s32.totalorder %s369_s15, %s369_s15 }
  0x5e   :  { %267 = vlog2.f32 %v100_v16  ;;  %v130_v23 = vadd.f32 %v129_v19, %v128_v17  ;;  %v125_v24 = vrot.slane %v124_v22, 1  ;;  %p376_p0 = por %p375_p13, %p374_p12 }
  0x60   :  { %v131_v25 = vrot.slane %v130_v23, 1  ;;  %v126_v29 = vadd.f32 %v125_v24, %v124_v22  ;;  %p377_p1 = pnand %p376_p0, %p370_p11 }
  0x62   :  { %v132_v31 = vadd.f32 %v131_v25, %v130_v23 }
  0x69   :  { %v266_v26 = vpop.eup %265 }
  0x6a   :  { %v102_v28 = vmul.f32 0.6931472, %v266_v26 }
  0x6b   :  { %v268_v27 = vpop.eup %267 }
  0x6c   :  { %v104_v30 = vmul.f32 0.6931472, %v268_v27  ;;  %v105_v32 = vadd.f32 %v102_v28, %v457_v20 }
  0x6e   :  { %v106_v33 = vadd.f32 %v104_v30, %v459_v21  ;;  %v133_v34 = vsub.f32 %v105_v32, %v126_v29 }
  0x70   :  { %v134_v35 = vsub.f32 %v106_v33, %v132_v31 }
  0x72   :  { %v137_v36 = vcombine.low %v133_v34, %v134_v35 }
  0x74   :  { %v144_v37 = vrot.slane %v137_v36, %v143_v56 }
  0x76   :  { %v151_v38 = vrot.slane %v144_v37, %v143_v56 }
  0x78   :  { %157 = vst.msk [vmem:[#allocation10] sm:$0x3] %vm465_vm5, %v151_v38 }
  0x79   :  { %380 = shalt.err (!%p377_p1)
}
  0x7a   :  { %229 = dma.vmem_to_hbm [thread:$0]  %s227_s14, 32, %s487_s4, [#allocation4]  }
  0x7b   :  { %395 = dma.done.wait [#allocation4], 32  }
  0x7c   :  { %396 = vsyncadd [#allocation4], 4294967264 }
  0x7d   :  { %397 = dma.done.wait [#allocation12], 32  }
  0x7e   :  { %398 = vsyncadd [#allocation12], 4294967264 }
  0x7f   :  { %246 = vsyncpa [#allocation3], 1 }
  0x80   :  { %247 = vsyncpa [#allocation6], 1 }
  0x81   :  { %248 = vsyncpa [#allocation9], 1 }
  0x82   :  { %249 = vsyncpa [#allocation4], 1 }
  0x83   :  { %250 = vsyncpa [#allocation12], 1 }

</bundles_post_ra>
